<compile_context>
chip_gen: v7x
topology: tpu7x:2x2x1
jax: 0.10.0
libtpu: 0.0.40
codegen_flags: <defaults>
</compile_context>

<pallas_src>
import jax
import jax.numpy as jnp
from jax.experimental import pallas as pl
from jax.experimental.pallas import tpu as pltpu


def linear_dropout_add_kernel(x_ref, w_ref, b_ref, res_ref, o_ref):
    # x_ref:   (tm, K)   row block of input
    # w_ref:   (K, N)    full weight, pre-transposed (in_features, out_features)
    # b_ref:   (1, N)    bias row
    # res_ref: (tm, N)   row block of residual
    # o_ref:   (tm, N)   row block of output
    acc = jnp.dot(x_ref[...], w_ref[...], preferred_element_type=jnp.float32)
    acc = acc + b_ref[...]       # broadcast (1, N) over rows
    acc = acc + res_ref[...]     # residual add (dropout == identity in eval mode)
    o_ref[...] = acc.astype(o_ref.dtype)


def _num_row_blocks():
    """2 row blocks on v7x (2 TensorCores/chip); single-shot elsewhere."""
    try:
        kind = jax.devices()[0].device_kind.lower()
    except Exception:
        return 1
    return 2 if "v7" in kind else 1


def linear_dropout_add(x, weight_t, bias, residual):
    """x, residual: (B, S, Hin); weight_t: (Hin, Hout) [pre-transposed once at init];
    bias: (Hout,)."""
    B, S, Hin = x.shape
    Hout = weight_t.shape[1]
    M = B * S

    x2 = x.reshape(M, Hin)
    r2 = residual.reshape(M, Hout)
    b2 = bias.reshape(1, Hout)

    nb = _num_row_blocks()
    if M % nb != 0 or (M // nb) % 8 != 0:
        nb = 1
    tm = M // nb

    cost = pl.CostEstimate(
        flops=2 * M * Hin * Hout,
        bytes_accessed=4 * (M * Hin + Hin * Hout + Hout + 2 * M * Hout),
        transcendentals=0,
    )

    out = pl.pallas_call(
        linear_dropout_add_kernel,
        out_shape=jax.ShapeDtypeStruct((M, Hout), x.dtype),
        grid=(nb,),
        in_specs=[
            pl.BlockSpec((tm, Hin), lambda i: (i, 0)),      # x rows
            pl.BlockSpec((Hin, Hout), lambda i: (0, 0)),    # full weight, once per core
            pl.BlockSpec((1, Hout), lambda i: (0, 0)),      # bias, once per core
            pl.BlockSpec((tm, Hout), lambda i: (i, 0)),     # residual rows
        ],
        out_specs=pl.BlockSpec((tm, Hout), lambda i: (i, 0)),
        compiler_params=pltpu.CompilerParams(
            dimension_semantics=("parallel",)),
        cost_estimate=cost,
    )(x2, weight_t, b2, r2)

    return out.reshape(B, S, Hout)


if __name__ == "__main__":
    key = jax.random.PRNGKey(0)
    k1, k2, k3, k4 = jax.random.split(key, 4)

    B, S, H = 1, 384, 256
    x271 = jax.random.normal(k1, (B, S, H), dtype=jnp.float32)
    x239 = jax.random.normal(k2, (B, S, H), dtype=jnp.float32)

    # Deterministic parameter init (nn.Linear shapes: weight (256, 256), bias (256,))
    bound = 1.0 / (H ** 0.5)
    weight = jax.random.uniform(k3, (H, H), minval=-bound, maxval=bound, dtype=jnp.float32)
    bias = jax.random.uniform(k4, (H,), minval=-bound, maxval=bound, dtype=jnp.float32)

    # One-time (init-time) transpose to (Hin, Hout); never re-done per call.
    weight_t = jnp.asarray(weight.T)

    out = linear_dropout_add(x271, weight_t, bias, x239)
    out = jax.block_until_ready(out)

    # Reference check in plain JAX
    ref = x271 @ weight.T + bias + x239
    assert jnp.allclose(out, ref, atol=1e-4, rtol=1e-4), "mismatch vs reference"

    print("KERNEL_OK")
</pallas_src>

<mosaic_0001>
module attributes {stable_mosaic.version = 11 : i64} {
  func.func @linear_dropout_add_kernel(%arg0: i32, %arg1: memref<384x256xf32, #tpu.memory_space<vmem>>, %arg2: memref<256x256xf32, #tpu.memory_space<vmem>>, %arg3: memref<1x256xf32, #tpu.memory_space<vmem>>, %arg4: memref<384x256xf32, #tpu.memory_space<vmem>>, %arg5: memref<384x256xf32, #tpu.memory_space<vmem>>) attributes {dimension_semantics = [#tpu.dimension_semantics<parallel>], iteration_bounds = array<i64: 1>, scalar_prefetch = 0 : i64, scratch_operands = 0 : i64, tpu.core_type = #tpu.core_type<tc>, window_params = [{transform_indices = @transform_0, window_bounds = array<i64: 384, 256>}, {pipeline_mode = #tpu.pipeline_mode<synchronous>, transform_indices = @transform_1, window_bounds = array<i64: 256, 256>}, {pipeline_mode = #tpu.pipeline_mode<synchronous>, transform_indices = @transform_2, window_bounds = array<i64: 1, 256>}, {transform_indices = @transform_3, window_bounds = array<i64: 384, 256>}, {transform_indices = @transform_4, window_bounds = array<i64: 384, 256>}]} {
    %c0 = arith.constant 0 : index
    %c0_0 = arith.constant 0 : index
    %0 = vector.load %arg1[%c0, %c0_0] : memref<384x256xf32, #tpu.memory_space<vmem>>, vector<384x256xf32>
    %c0_1 = arith.constant 0 : index
    %c0_2 = arith.constant 0 : index
    %1 = vector.load %arg2[%c0_1, %c0_2] : memref<256x256xf32, #tpu.memory_space<vmem>>, vector<256x256xf32>
    %cst = arith.constant dense<0.000000e+00> : vector<384x256xf32>
    %2 = tpu.matmul %0, %1, %cst {dimension_numbers = #tpu.dot_dimension_numbers<[1], [0], [0], [1], [0, 0, 1, 1], [], []>} : vector<384x256xf32>, vector<256x256xf32>, vector<384x256xf32> -> vector<384x256xf32>
    %c0_3 = arith.constant 0 : index
    %c0_4 = arith.constant 0 : index
    %3 = vector.load %arg3[%c0_3, %c0_4] : memref<1x256xf32, #tpu.memory_space<vmem>>, vector<1x256xf32>
    %4 = vector.broadcast %3 : vector<1x256xf32> to vector<384x256xf32>
    %5 = arith.addf %2, %4 : vector<384x256xf32>
    %c0_5 = arith.constant 0 : index
    %c0_6 = arith.constant 0 : index
    %6 = vector.load %arg4[%c0_5, %c0_6] : memref<384x256xf32, #tpu.memory_space<vmem>>, vector<384x256xf32>
    %7 = arith.addf %5, %6 : vector<384x256xf32>
    %c0_7 = arith.constant 0 : index
    %c0_8 = arith.constant 0 : index
    %8 = vector.load %arg5[%c0_7, %c0_8] : memref<384x256xf32, #tpu.memory_space<vmem>>, vector<384x256xf32>
    tpu.vector_store %arg5[%c0_7, %c0_8], %7 {strides = array<i32>} : memref<384x256xf32, #tpu.memory_space<vmem>>, vector<384x256xf32>,
    return
  }
  func.func @transform_0(%arg0: i32) -> (i32, i32) {
    %c0_i32 = arith.constant 0 : i32
    %c0_i32_0 = arith.constant 0 : i32
    return %arg0, %c0_i32 : i32, i32
  }
  func.func @transform_1(%arg0: i32) -> (i32, i32) {
    %c0_i32 = arith.constant 0 : i32
    %c0_i32_0 = arith.constant 0 : i32
    %c0_i32_1 = arith.constant 0 : i32
    return %c0_i32, %c0_i32_0 : i32, i32
  }
  func.func @transform_2(%arg0: i32) -> (i32, i32) {
    %c0_i32 = arith.constant 0 : i32
    %c0_i32_0 = arith.constant 0 : i32
    %c0_i32_1 = arith.constant 0 : i32
    return %c0_i32, %c0_i32_0 : i32, i32
  }
  func.func @transform_3(%arg0: i32) -> (i32, i32) {
    %c0_i32 = arith.constant 0 : i32
    %c0_i32_0 = arith.constant 0 : i32
    return %arg0, %c0_i32 : i32, i32
  }
  func.func @transform_4(%arg0: i32) -> (i32, i32) {
    %c0_i32 = arith.constant 0 : i32
    %c0_i32_0 = arith.constant 0 : i32
    return %arg0, %c0_i32 : i32, i32
  }
}

</mosaic_0001>

<bundles_post_ra>
// kernel: tpu_custom_call.1
= control target key start
LH: loop header
LB: loop body
LE: loop exit
PB: predicated region body
PF: predicated region fallthrough
CT: control target
= control target key end

     0   :  { %9 = vsyncpa [#allocation3], 0  ;;  %s1287_s0 = inlined_call_operand.hbm [shape: f32[384,256], index: 0, kind: input, shape index: {}]   ;;  %s1288_s1 = inlined_call_operand.hbm [shape: f32[256,256], index: 1, kind: input, shape index: {}]   ;;  %s1289_s2 = inlined_call_operand.vmem [shape: f32[1,256], index: 2, kind: input, shape index: {}]   ;;  %s1290_s3 = inlined_call_operand.hbm [shape: f32[384,256], index: 3, kind: input, shape index: {}]   ;;  %s1291_s4 = inlined_call_operand.hbm [shape: f32[384,256], index: 4, kind: output, shape index: {}]  }
   0x1   :  { %10 = vsyncpa [#allocation6], 0 }
   0x2   :  { %11 = vsyncpa [#allocation4], 0  ;;  %s1086_s15 = smov [#allocation5]   ;;  %s1087_s17 = smov [#allocation2]  }
   0x3   :  { %s29_s16 = sshll.u32 %s1086_s15, 4  ;;  %s17_s18 = sshll.u32 %s1087_s17, 4  ;;  %s30_s16 = int_to_ptr.vmem [resolvable:$true] %s29_s16  ;;  %s1117_s18 = int_to_ptr.vmem [resolvable:$true] %s17_s18 }
   0x4   :  { %s992_s21 = scalar_lea.hbm %s1288_s1, 8192 }
   0x5   :  { %p993_p0 = scmp.ne.s32.totalorder %s1288_s1, %s992_s21  ;;  %p996_p1 = scmp.lt.u32.totalorder %s992_s21, %s1288_s1 }
   0x7   :  { %p998_p2 = pnand %p996_p1, %p993_p0 }
   0x9   :  { %1001 = shalt.err (!%p998_p2)
}
   0xa   :  { %s1002_s26 = scalar_lea.vmem %s30_s16, 8192  ;;  %p1007_p4 = scmp.lt.s32.totalorder %s30_s16, %s30_s16 }
   0xb   :  { %p1003_p3 = scmp.ne.s32.totalorder %s30_s16, %s1002_s26  ;;  %p1008_p5 = scmp.lt.s32.totalorder %s1002_s26, %s1002_s26 }
   0xd   :  { %p1009_p6 = por %p1008_p5, %p1007_p4 }
   0xf   :  { %p1010_p7 = pnand %p1009_p6, %p1003_p3 }
  0x11   :  { %1013 = shalt.err (!%p1010_p7)
}
  0x12   :  { %s1088_s27 = smov 256   ;;  %s1089_s28 = smov 16  }
  0x13   :  { %35 = dma.hbm_to_vmem [thread:$0]  %s1288_s1, 8192, %s30_s16, [#allocation6], %s1088_s27, %s1088_s27, %s1089_s28  }
  0x14   :  { %s1014_s7 = scalar_lea.hbm %s1287_s0, 12288 }
  0x15   :  { %p1015_p8 = scmp.ne.s32.totalorder %s1287_s0, %s1014_s7  ;;  %p1018_p9 = scmp.lt.u32.totalorder %s1014_s7, %s1287_s0 }
  0x17   :  { %p1020_p10 = pnand %p1018_p9, %p1015_p8 }
  0x19   :  { %1023 = shalt.err (!%p1020_p10)
}
  0x1a   :  { %s1024_s12 = scalar_lea.vmem %s1117_s18, 12288  ;;  %p1029_p12 = scmp.lt.s32.totalorder %s1117_s18, %s1117_s18 }
  0x1b   :  { %p1025_p11 = scmp.ne.s32.totalorder %s1117_s18, %s1024_s12  ;;  %p1030_p13 = scmp.lt.s32.totalorder %s1024_s12, %s1024_s12 }
  0x1d   :  { %p1031_p0 = por %p1030_p13, %p1029_p12 }
  0x1f   :  { %p1032_p1 = pnand %p1031_p0, %p1025_p11 }
  0x21   :  { %1035 = shalt.err (!%p1032_p1)
}
  0x22   :  { %23 = dma.hbm_to_vmem [thread:$0]  %s1287_s0, 12288, %s1117_s18, [#allocation3], %s1088_s27, %s1088_s27, %s1089_s28  }
  0x23   :  { %s1090_s14 = smov [#allocation7]   ;;  %s1036_s19 = scalar_lea.hbm %s1290_s3, 12288 }
  0x24   :  { %s43_s15 = sshll.u32 %s1090_s14, 4  ;;  %p1037_p2 = scmp.ne.s32.totalorder %s1290_s3, %s1036_s19  ;;  %s44_s15 = int_to_ptr.vmem [resolvable:$true] %s43_s15 }
  0x25   :  { %p1040_p3 = scmp.lt.u32.totalorder %s1036_s19, %s1290_s3 }
  0x27   :  { %p1042_p4 = pnand %p1040_p3, %p1037_p2 }
  0x29   :  { %1045 = shalt.err (!%p1042_p4)
}
  0x2a   :  { %s1046_s24 = scalar_lea.vmem %s44_s15, 12288  ;;  %p1051_p6 = scmp.lt.s32.totalorder %s44_s15, %s44_s15 }
  0x2b   :  { %p1047_p5 = scmp.ne.s32.totalorder %s44_s15, %s1046_s24  ;;  %p1052_p7 = scmp.lt.s32.totalorder %s1046_s24, %s1046_s24 }
  0x2d   :  { %p1053_p8 = por %p1052_p7, %p1051_p6 }
  0x2f   :  { %p1054_p9 = pnand %p1053_p8, %p1047_p5 }
  0x31   :  { %1057 = shalt.err (!%p1054_p9)
}
  0x32   :  { %49 = dma.hbm_to_vmem [thread:$0]  %s1290_s3, 12288, %s44_s15, [#allocation6], %s1088_s27, %s1088_s27, %s1089_s28  }
  0x33   :  { %1080 = dma.done.wait [#allocation3], 12288  }
  0x34   :  { %1081 = vsyncadd [#allocation3], 4294955008 }
  0x35   :  { %1082 = dma.done.wait [#allocation6], 20480  }
  0x36   :  { %1083 = vsyncadd [#allocation6], 4294946816  ;;  %v156_v0 = vld [vmem:[#allocation5 + $0x8] sm:$0xff]  ;;  %v158_v1 = vld [vmem:[#allocation5 + $0x18] sm:$0xff] }
  0x37   :  { %v155_v2 = vld [vmem:[#allocation5] sm:$0xff]  ;;  %v890_v3 = vpack.c.bf16 %v158_v1, %v156_v0  ;;  %v157_v4 = vld [vmem:[#allocation5 + $0x10] sm:$0xff]  ;;  %v160_v5 = vld [vmem:[#allocation5 + $0x28] sm:$0xff] }
  0x38   :  { %v162_v6 = vld [vmem:[#allocation5 + $0x38] sm:$0xff]  ;;  %v892_v7 = vpack.c.bf16 %v157_v4, %v155_v2  ;;  %v159_v9 = vld [vmem:[#allocation5 + $0x20] sm:$0xff]  ;;  %v161_v10 = vld [vmem:[#allocation5 + $0x30] sm:$0xff] }
  0x39   :  { %v894_v8 = vpack.c.bf16 %v162_v6, %v160_v5  ;;  %v164_v11 = vld [vmem:[#allocation5 + $0x48] sm:$0xff]  ;;  %891 = vmatprep.subr.bf16.mxu0 %v890_v3  ;;  %954 = vmatprep.subr.bf16.mxu1 %v890_v3  ;;  %v166_v12 = vld [vmem:[#allocation5 + $0x58] sm:$0xff]  ;;  %v896_v13 = vpack.c.bf16 %v161_v10, %v159_v9  ;;  %v163_v15 = vld [vmem:[#allocation5 + $0x40] sm:$0xff] }
  0x3a   :  { %893 = vmatpush1.bf16.msra.mxu0 %v892_v7  ;;  %970 = vmatpush1.bf16.msra.mxu1 %v892_v7  ;;  %v898_v14 = vpack.c.bf16 %v166_v12, %v164_v11  ;;  %v165_v16 = vld [vmem:[#allocation5 + $0x50] sm:$0xff]  ;;  %v168_v17 = vld [vmem:[#allocation5 + $0x68] sm:$0xff]  ;;  %v170_v18 = vld [vmem:[#allocation5 + $0x78] sm:$0xff] }
  0x3b   :  { %895 = vmatprep.subr.bf16.mxu0 %v894_v8  ;;  %955 = vmatprep.subr.bf16.mxu1 %v894_v8  ;;  %v900_v19 = vpack.c.bf16 %v165_v16, %v163_v15  ;;  %v902_v20 = vpack.c.bf16 %v170_v18, %v168_v17  ;;  %v167_v21 = vld [vmem:[#allocation5 + $0x60] sm:$0xff]  ;;  %v169_v22 = vld [vmem:[#allocation5 + $0x70] sm:$0xff]  ;;  %v172_v23 = vld [vmem:[#allocation5 + $0x88] sm:$0xff] }
  0x3c   :  { %v174_v24 = vld [vmem:[#allocation5 + $0x98] sm:$0xff]  ;;  %v904_v25 = vpack.c.bf16 %v169_v22, %v167_v21  ;;  %v171_v27 = vld [vmem:[#allocation5 + $0x80] sm:$0xff]  ;;  %v173_v28 = vld [vmem:[#allocation5 + $0x90] sm:$0xff] }
  0x3d   :  { %v906_v26 = vpack.c.bf16 %v174_v24, %v172_v23  ;;  %v176_v29 = vld [vmem:[#allocation5 + $0xa8] sm:$0xff]  ;;  %v178_v30 = vld [vmem:[#allocation5 + $0xb8] sm:$0xff]  ;;  %v908_v31 = vpack.c.bf16 %v173_v28, %v171_v27  ;;  %v175_v33 = vld [vmem:[#allocation5 + $0xa0] sm:$0xff] }
  0x3e   :  { %897 = vmatpush1.bf16.msra.mxu0 %v896_v13  ;;  %971 = vmatpush1.bf16.msra.mxu1 %v896_v13  ;;  %v910_v32 = vpack.c.bf16 %v178_v30, %v176_v29  ;;  %v177_v34 = vld [vmem:[#allocation5 + $0xb0] sm:$0xff]  ;;  %v180_v35 = vld [vmem:[#allocation5 + $0xc8] sm:$0xff]  ;;  %v182_v36 = vld [vmem:[#allocation5 + $0xd8] sm:$0xff] }
  0x3f   :  { %899 = vmatprep.subr.bf16.mxu0 %v898_v14  ;;  %956 = vmatprep.subr.bf16.mxu1 %v898_v14  ;;  %v912_v37 = vpack.c.bf16 %v177_v34, %v175_v33  ;;  %v179_v38 = vld [vmem:[#allocation5 + $0xc0] sm:$0xff]  ;;  %v914_v39 = vpack.c.bf16 %v182_v36, %v180_v35  ;;  %v181_v40 = vld [vmem:[#allocation5 + $0xd0] sm:$0xff]  ;;  %v60_v41 = vld [vmem:[#allocation2 + $0x8] sm:$0xff] }
  0x40   :  { %v108_v42 = vld [vmem:[#allocation2 + $0x188] sm:$0xff]  ;;  %v186_v44 = vld [vmem:[#allocation5 + $0xf8] sm:$0xff]  ;;  %295 = vmatprep.mubr.f32.mxu0 %v60_v41  ;;  %v916_v45 = vpack.c.bf16 %v181_v40, %v179_v38  ;;  %v183_v47 = vld [vmem:[#allocation5 + $0xe0] sm:$0xff] }
  0x41   :  { %v184_v43 = vld [vmem:[#allocation5 + $0xe8] sm:$0xff]  ;;  %439 = vmatprep.mubr.f32.mxu1 %v108_v42  ;;  %v185_v48 = vld [vmem:[#allocation5 + $0xf0] sm:$0xff]  ;;  %v190_v50 = vld [vmem:[#allocation5 + $0x118] sm:$0xff] }
  0x42   :  { %901 = vmatpush1.bf16.msra.mxu0 %v900_v19  ;;  %972 = vmatpush1.bf16.msra.mxu1 %v900_v19  ;;  %v918_v46 = vpack.c.bf16 %v186_v44, %v184_v43  ;;  %v188_v49 = vld [vmem:[#allocation5 + $0x108] sm:$0xff]  ;;  %v920_v51 = vpack.c.bf16 %v185_v48, %v183_v47  ;;  %v187_v53 = vld [vmem:[#allocation5 + $0x100] sm:$0xff]  ;;  %v189_v54 = vld [vmem:[#allocation5 + $0x110] sm:$0xff] }
  0x43   :  { %903 = vmatprep.subr.bf16.mxu0 %v902_v20  ;;  %957 = vmatprep.subr.bf16.mxu1 %v902_v20  ;;  %v922_v52 = vpack.c.bf16 %v190_v50, %v188_v49  ;;  %v192_v55 = vld [vmem:[#allocation5 + $0x128] sm:$0xff]  ;;  %v194_v56 = vld [vmem:[#allocation5 + $0x138] sm:$0xff]  ;;  %v924_v57 = vpack.c.bf16 %v189_v54, %v187_v53  ;;  %v191_v59 = vld [vmem:[#allocation5 + $0x120] sm:$0xff] }
  0x44   :  { %v926_v58 = vpack.c.bf16 %v194_v56, %v192_v55  ;;  %v193_v60 = vld [vmem:[#allocation5 + $0x130] sm:$0xff]  ;;  %v196_v61 = vld [vmem:[#allocation5 + $0x148] sm:$0xff]  ;;  %v198_v62 = vld [vmem:[#allocation5 + $0x158] sm:$0xff] }
  0x45   :  { %v928_v63 = vpack.c.bf16 %v193_v60, %v191_v59  ;;  %v930_v0 = vpack.c.bf16 %v198_v62, %v196_v61  ;;  %v195_v1 = vld [vmem:[#allocation5 + $0x140] sm:$0xff]  ;;  %v197_v2 = vld [vmem:[#allocation5 + $0x150] sm:$0xff]  ;;  %v200_v3 = vld [vmem:[#allocation5 + $0x168] sm:$0xff] }
  0x46   :  { %905 = vmatpush1.bf16.msra.mxu0 %v904_v25  ;;  %973 = vmatpush1.bf16.msra.mxu1 %v904_v25  ;;  %v202_v4 = vld [vmem:[#allocation5 + $0x178] sm:$0xff]  ;;  %v932_v5 = vpack.c.bf16 %v197_v2, %v195_v1  ;;  %v199_v7 = vld [vmem:[#allocation5 + $0x160] sm:$0xff]  ;;  %v201_v8 = vld [vmem:[#allocation5 + $0x170] sm:$0xff] }
  0x47   :  { %907 = vmatprep.subr.bf16.mxu0 %v906_v26  ;;  %958 = vmatprep.subr.bf16.mxu1 %v906_v26  ;;  %v934_v6 = vpack.c.bf16 %v202_v4, %v200_v3  ;;  %v204_v9 = vld [vmem:[#allocation5 + $0x188] sm:$0xff]  ;;  %v206_v10 = vld [vmem:[#allocation5 + $0x198] sm:$0xff]  ;;  %v936_v11 = vpack.c.bf16 %v201_v8, %v199_v7  ;;  %v203_v13 = vld [vmem:[#allocation5 + $0x180] sm:$0xff] }
  0x48   :  { %v938_v12 = vpack.c.bf16 %v206_v10, %v204_v9  ;;  %v205_v14 = vld [vmem:[#allocation5 + $0x190] sm:$0xff]  ;;  %v208_v15 = vld [vmem:[#allocation5 + $0x1a8] sm:$0xff]  ;;  %v210_v16 = vld [vmem:[#allocation5 + $0x1b8] sm:$0xff] }
  0x49   :  { %v940_v17 = vpack.c.bf16 %v205_v14, %v203_v13  ;;  %v942_v18 = vpack.c.bf16 %v210_v16, %v208_v15  ;;  %v207_v19 = vld [vmem:[#allocation5 + $0x1a0] sm:$0xff]  ;;  %v209_v20 = vld [vmem:[#allocation5 + $0x1b0] sm:$0xff]  ;;  %v212_v21 = vld [vmem:[#allocation5 + $0x1c8] sm:$0xff] }
  0x4a   :  { %909 = vmatpush1.bf16.msra.mxu0 %v908_v31  ;;  %974 = vmatpush1.bf16.msra.mxu1 %v908_v31  ;;  %v214_v22 = vld [vmem:[#allocation5 + $0x1d8] sm:$0xff]  ;;  %v944_v23 = vpack.c.bf16 %v209_v20, %v207_v19  ;;  %v211_v25 = vld [vmem:[#allocation5 + $0x1c0] sm:$0xff]  ;;  %v213_v26 = vld [vmem:[#allocation5 + $0x1d0] sm:$0xff] }
  0x4b   :  { %911 = vmatprep.subr.bf16.mxu0 %v910_v32  ;;  %959 = vmatprep.subr.bf16.mxu1 %v910_v32  ;;  %v946_v24 = vpack.c.bf16 %v214_v22, %v212_v21  ;;  %v216_v27 = vld [vmem:[#allocation5 + $0x1e8] sm:$0xff]  ;;  %v218_v28 = vld [vmem:[#allocation5 + $0x1f8] sm:$0xff]  ;;  %v948_v29 = vpack.c.bf16 %v213_v26, %v211_v25  ;;  %v215_v31 = vld [vmem:[#allocation5 + $0x1e0] sm:$0xff] }
  0x4c   :  { %v950_v30 = vpack.c.bf16 %v218_v28, %v216_v27  ;;  %v217_v32 = vld [vmem:[#allocation5 + $0x1f0] sm:$0xff]  ;;  %v59_v34 = vld [vmem:[#allocation2] sm:$0xff]  ;;  %v62_v36 = vld [vmem:[#allocation2 + $0x18] sm:$0xff] }
  0x4d   :  { %v952_v33 = vpack.c.bf16 %v217_v32, %v215_v31  ;;  %v107_v35 = vld [vmem:[#allocation2 + $0x180] sm:$0xff]  ;;  %v61_v38 = vld [vmem:[#allocation2 + $0x10] sm:$0xff]  ;;  %v64_v40 = vld [vmem:[#allocation2 + $0x28] sm:$0xff] }
  0x4e   :  { %913 = vmatpush1.bf16.msra.mxu0 %v912_v37  ;;  %975 = vmatpush1.bf16.msra.mxu1 %v912_v37  ;;  %v110_v37 = vld [vmem:[#allocation2 + $0x198] sm:$0xff]  ;;  %v112_v41 = vld [vmem:[#allocation2 + $0x1a8] sm:$0xff]  ;;  %v63_v42 = vld [vmem:[#allocation2 + $0x20] sm:$0xff] }
  0x4f   :  { %915 = vmatprep.subr.bf16.mxu0 %v914_v39  ;;  %960 = vmatprep.subr.bf16.mxu1 %v914_v39  ;;  %v109_v39 = vld [vmem:[#allocation2 + $0x190] sm:$0xff]  ;;  %v111_v43 = vld [vmem:[#allocation2 + $0x1a0] sm:$0xff]  ;;  %v66_v44 = vld [vmem:[#allocation2 + $0x38] sm:$0xff] }
  0x50   :  { %v113_v47 = vld [vmem:[#allocation2 + $0x1b0] sm:$0xff]  ;;  %v68_v48 = vld [vmem:[#allocation2 + $0x48] sm:$0xff]  ;;  %v67_v50 = vld [vmem:[#allocation2 + $0x40] sm:$0xff] }
  0x51   :  { %v116_v49 = vld [vmem:[#allocation2 + $0x1c8] sm:$0xff]  ;;  %v118_v53 = vld [vmem:[#allocation2 + $0x1d8] sm:$0xff]  ;;  %v69_v54 = vld [vmem:[#allocation2 + $0x50] sm:$0xff] }
  0x52   :  { %917 = vmatpush1.bf16.msra.mxu0 %v916_v45  ;;  %976 = vmatpush1.bf16.msra.mxu1 %v916_v45  ;;  %v114_v45 = vld [vmem:[#allocation2 + $0x1b8] sm:$0xff]  ;;  %v117_v55 = vld [vmem:[#allocation2 + $0x1d0] sm:$0xff]  ;;  %v72_v56 = vld [vmem:[#allocation2 + $0x68] sm:$0xff] }
  0x53   :  { %919 = vmatprep.subr.bf16.mxu0 %v918_v46  ;;  %961 = vmatprep.subr.bf16.mxu1 %v918_v46  ;;  %v65_v46 = vld [vmem:[#allocation2 + $0x30] sm:$0xff]  ;;  %v119_v59 = vld [vmem:[#allocation2 + $0x1e0] sm:$0xff]  ;;  %v74_v60 = vld [vmem:[#allocation2 + $0x78] sm:$0xff] }
  0x54   :  { %v122_v61 = vld [vmem:[#allocation2 + $0x1f8] sm:$0xff]  ;;  %v73_v62 = vld [vmem:[#allocation2 + $0x70] sm:$0xff]  ;;  %v124_v1 = vld [vmem:[#allocation2 + $0x208] sm:$0xff] }
  0x55   :  { %v75_v2 = vld [vmem:[#allocation2 + $0x80] sm:$0xff]  ;;  %v78_v4 = vld [vmem:[#allocation2 + $0x98] sm:$0xff]  ;;  %v125_v7 = vld [vmem:[#allocation2 + $0x210] sm:$0xff] }
  0x56   :  { %921 = vmatpush1.bf16.msra.mxu0 %v920_v51  ;;  %977 = vmatpush1.bf16.msra.mxu1 %v920_v51  ;;  %v115_v51 = vld [vmem:[#allocation2 + $0x1c0] sm:$0xff]  ;;  %v80_v8 = vld [vmem:[#allocation2 + $0xa8] sm:$0xff]  ;;  %v130_v13 = vld [vmem:[#allocation2 + $0x238] sm:$0xff] }
  0x57   :  { %923 = vmatprep.subr.bf16.mxu0 %v922_v52  ;;  %962 = vmatprep.subr.bf16.mxu1 %v922_v52  ;;  %v70_v52 = vld [vmem:[#allocation2 + $0x58] sm:$0xff]  ;;  %v123_v3 = vld [vmem:[#allocation2 + $0x200] sm:$0xff]  ;;  %v128_v9 = vld [vmem:[#allocation2 + $0x228] sm:$0xff] }
  0x58   :  { %v79_v10 = vld [vmem:[#allocation2 + $0xa0] sm:$0xff]  ;;  %v81_v14 = vld [vmem:[#allocation2 + $0xb0] sm:$0xff]  ;;  %v84_v16 = vld [vmem:[#allocation2 + $0xc8] sm:$0xff] }
  0x59   :  { %v129_v15 = vld [vmem:[#allocation2 + $0x230] sm:$0xff]  ;;  %v131_v19 = vld [vmem:[#allocation2 + $0x240] sm:$0xff]  ;;  %v86_v20 = vld [vmem:[#allocation2 + $0xd8] sm:$0xff] }
  0x5a   :  { %925 = vmatpush1.bf16.msra.mxu0 %v924_v57  ;;  %978 = vmatpush1.bf16.msra.mxu1 %v924_v57  ;;  %v120_v57 = vld [vmem:[#allocation2 + $0x1e8] sm:$0xff]  ;;  %v134_v21 = vld [vmem:[#allocation2 + $0x258] sm:$0xff]  ;;  %v85_v22 = vld [vmem:[#allocation2 + $0xd0] sm:$0xff] }
  0x5b   :  { %927 = vmatprep.subr.bf16.mxu0 %v926_v58  ;;  %963 = vmatprep.subr.bf16.mxu1 %v926_v58  ;;  %v71_v58 = vld [vmem:[#allocation2 + $0x60] sm:$0xff]  ;;  %v136_v25 = vld [vmem:[#allocation2 + $0x268] sm:$0xff]  ;;  %v90_v28 = vld [vmem:[#allocation2 + $0xf8] sm:$0xff] }
  0x5c   :  { %v87_v26 = vld [vmem:[#allocation2 + $0xe0] sm:$0xff]  ;;  %v137_v31 = vld [vmem:[#allocation2 + $0x270] sm:$0xff]  ;;  %v92_v32 = vld [vmem:[#allocation2 + $0x108] sm:$0xff] }
  0x5d   :  { %v135_v27 = vld [vmem:[#allocation2 + $0x260] sm:$0xff] }
  0x5e   :  { %929 = vmatpush1.bf16.msra.mxu0 %v928_v63  ;;  %979 = vmatpush1.bf16.msra.mxu1 %v928_v63  ;;  %v121_v63 = vld [vmem:[#allocation2 + $0x1f0] sm:$0xff] }
  0x5f   :  { %931 = vmatprep.subr.bf16.mxu0 %v930_v0  ;;  %964 = vmatprep.subr.bf16.mxu1 %v930_v0  ;;  %v76_v0 = vld [vmem:[#allocation2 + $0x88] sm:$0xff] }
  0x62   :  { %933 = vmatpush1.bf16.msra.mxu0 %v932_v5  ;;  %980 = vmatpush1.bf16.msra.mxu1 %v932_v5  ;;  %v126_v5 = vld [vmem:[#allocation2 + $0x218] sm:$0xff] }
  0x63   :  { %935 = vmatprep.subr.bf16.mxu0 %v934_v6  ;;  %965 = vmatprep.subr.bf16.mxu1 %v934_v6  ;;  %v77_v6 = vld [vmem:[#allocation2 + $0x90] sm:$0xff] }
  0x66   :  { %937 = vmatpush1.bf16.msra.mxu0 %v936_v11  ;;  %981 = vmatpush1.bf16.msra.mxu1 %v936_v11  ;;  %v127_v11 = vld [vmem:[#allocation2 + $0x220] sm:$0xff] }
  0x67   :  { %939 = vmatprep.subr.bf16.mxu0 %v938_v12  ;;  %966 = vmatprep.subr.bf16.mxu1 %v938_v12  ;;  %v82_v12 = vld [vmem:[#allocation2 + $0xb8] sm:$0xff] }
  0x6a   :  { %941 = vmatpush1.bf16.msra.mxu0 %v940_v17  ;;  %982 = vmatpush1.bf16.msra.mxu1 %v940_v17  ;;  %v132_v17 = vld [vmem:[#allocation2 + $0x248] sm:$0xff] }
  0x6b   :  { %943 = vmatprep.subr.bf16.mxu0 %v942_v18  ;;  %967 = vmatprep.subr.bf16.mxu1 %v942_v18  ;;  %v83_v18 = vld [vmem:[#allocation2 + $0xc0] sm:$0xff] }
  0x6e   :  { %945 = vmatpush1.bf16.msra.mxu0 %v944_v23  ;;  %983 = vmatpush1.bf16.msra.mxu1 %v944_v23  ;;  %v133_v23 = vld [vmem:[#allocation2 + $0x250] sm:$0xff] }
  0x6f   :  { %947 = vmatprep.subr.bf16.mxu0 %v946_v24  ;;  %968 = vmatprep.subr.bf16.mxu1 %v946_v24  ;;  %v88_v24 = vld [vmem:[#allocation2 + $0xe8] sm:$0xff] }
  0x72   :  { %949 = vmatpush1.bf16.msra.mxu0 %v948_v29  ;;  %984 = vmatpush1.bf16.msra.mxu1 %v948_v29  ;;  %v138_v29 = vld [vmem:[#allocation2 + $0x278] sm:$0xff] }
  0x73   :  { %951 = vmatprep.subr.bf16.mxu0 %v950_v30  ;;  %969 = vmatprep.subr.bf16.mxu1 %v950_v30  ;;  %v89_v30 = vld [vmem:[#allocation2 + $0xf0] sm:$0xff] }
  0x76   :  { %953 = vmatpush1.bf16.msra.mxu0 %v952_v33  ;;  %985 = vmatpush1.bf16.msra.mxu1 %v952_v33  ;;  %v140_v33 = vld [vmem:[#allocation2 + $0x288] sm:$0xff] }
  0x79   :  { %296 = vmatmul.mubr.f32.vlgmr.msra.gmra.mrb[0].mxu0 %v59_v34  ;;  %440 = vmatmul.mubr.f32.vlgmr.msra.gmra.mrb[0].mxu1 %v107_v35  ;;  %v91_v34 = vld [vmem:[#allocation2 + $0x100] sm:$0xff] }
  0x7a   :  { %301 = vmatprep.mubr.f32.mxu0 %v62_v36  ;;  %445 = vmatprep.mubr.f32.mxu1 %v110_v37  ;;  %v139_v35 = vld [vmem:[#allocation2 + $0x280] sm:$0xff]  ;;  %v94_v36 = vld [vmem:[#allocation2 + $0x118] sm:$0xff] }
  0x7b   :  { %v142_v37 = vld [vmem:[#allocation2 + $0x298] sm:$0xff] }
  0x7d   :  { %302 = vmatmul.mubr.f32.gmra.mrb[2].mxu0 %v61_v38  ;;  %446 = vmatmul.mubr.f32.gmra.mrb[2].mxu1 %v109_v39  ;;  %v93_v38 = vld [vmem:[#allocation2 + $0x110] sm:$0xff] }
  0x7e   :  { %307 = vmatprep.mubr.f32.mxu0 %v64_v40  ;;  %451 = vmatprep.mubr.f32.mxu1 %v112_v41  ;;  %v141_v39 = vld [vmem:[#allocation2 + $0x290] sm:$0xff]  ;;  %v96_v40 = vld [vmem:[#allocation2 + $0x128] sm:$0xff] }
  0x7f   :  { %v144_v41 = vld [vmem:[#allocation2 + $0x2a8] sm:$0xff] }
  0x81   :  { %308 = vmatmul.mubr.f32.gmra.mrb[4].mxu0 %v63_v42  ;;  %452 = vmatmul.mubr.f32.gmra.mrb[4].mxu1 %v111_v43  ;;  %v95_v42 = vld [vmem:[#allocation2 + $0x120] sm:$0xff] }
  0x82   :  { %313 = vmatprep.mubr.f32.mxu0 %v66_v44  ;;  %457 = vmatprep.mubr.f32.mxu1 %v114_v45  ;;  %v143_v43 = vld [vmem:[#allocation2 + $0x2a0] sm:$0xff]  ;;  %v98_v44 = vld [vmem:[#allocation2 + $0x138] sm:$0xff] }
  0x83   :  { %v146_v45 = vld [vmem:[#allocation2 + $0x2b8] sm:$0xff] }
  0x85   :  { %314 = vmatmul.mubr.f32.gmra.mrb[6].mxu0 %v65_v46  ;;  %458 = vmatmul.mubr.f32.gmra.mrb[6].mxu1 %v113_v47  ;;  %v97_v46 = vld [vmem:[#allocation2 + $0x130] sm:$0xff] }
  0x86   :  { %319 = vmatprep.mubr.f32.mxu0 %v68_v48  ;;  %463 = vmatprep.mubr.f32.mxu1 %v116_v49  ;;  %v145_v47 = vld [vmem:[#allocation2 + $0x2b0] sm:$0xff]  ;;  %v100_v48 = vld [vmem:[#allocation2 + $0x148] sm:$0xff] }
  0x87   :  { %v148_v49 = vld [vmem:[#allocation2 + $0x2c8] sm:$0xff] }
  0x89   :  { %320 = vmatmul.mubr.f32.gmra.mrb[8].mxu0 %v67_v50  ;;  %464 = vmatmul.mubr.f32.gmra.mrb[8].mxu1 %v115_v51  ;;  %v99_v50 = vld [vmem:[#allocation2 + $0x140] sm:$0xff] }
  0x8a   :  { %325 = vmatprep.mubr.f32.mxu0 %v70_v52  ;;  %469 = vmatprep.mubr.f32.mxu1 %v118_v53  ;;  %v147_v51 = vld [vmem:[#allocation2 + $0x2c0] sm:$0xff]  ;;  %v102_v52 = vld [vmem:[#allocation2 + $0x158] sm:$0xff] }
  0x8b   :  { %v150_v53 = vld [vmem:[#allocation2 + $0x2d8] sm:$0xff] }
  0x8d   :  { %326 = vmatmul.mubr.f32.gmra.mrb[10].mxu0 %v69_v54  ;;  %470 = vmatmul.mubr.f32.gmra.mrb[10].mxu1 %v117_v55  ;;  %v101_v54 = vld [vmem:[#allocation2 + $0x150] sm:$0xff] }
  0x8e   :  { %331 = vmatprep.mubr.f32.mxu0 %v72_v56  ;;  %475 = vmatprep.mubr.f32.mxu1 %v120_v57  ;;  %v149_v55 = vld [vmem:[#allocation2 + $0x2d0] sm:$0xff]  ;;  %v104_v56 = vld [vmem:[#allocation2 + $0x168] sm:$0xff] }
  0x8f   :  { %v152_v57 = vld [vmem:[#allocation2 + $0x2e8] sm:$0xff] }
  0x91   :  { %332 = vmatmul.mubr.f32.gmra.mrb[12].mxu0 %v71_v58  ;;  %476 = vmatmul.mubr.f32.gmra.mrb[12].mxu1 %v119_v59  ;;  %v103_v58 = vld [vmem:[#allocation2 + $0x160] sm:$0xff] }
  0x92   :  { %337 = vmatprep.mubr.f32.mxu0 %v74_v60  ;;  %481 = vmatprep.mubr.f32.mxu1 %v122_v61  ;;  %v151_v59 = vld [vmem:[#allocation2 + $0x2e0] sm:$0xff]  ;;  %v106_v60 = vld [vmem:[#allocation2 + $0x178] sm:$0xff] }
  0x93   :  { %v154_v61 = vld [vmem:[#allocation2 + $0x2f8] sm:$0xff] }
  0x95   :  { %338 = vmatmul.mubr.f32.gmra.mrb[14].mxu0 %v73_v62  ;;  %482 = vmatmul.mubr.f32.gmra.mrb[14].mxu1 %v121_v63  ;;  %v105_v62 = vld [vmem:[#allocation2 + $0x170] sm:$0xff] }
  0x96   :  { %343 = vmatprep.mubr.f32.mxu0 %v76_v0  ;;  %487 = vmatprep.mubr.f32.mxu1 %v124_v1  ;;  %v153_v63 = vld [vmem:[#allocation2 + $0x2f0] sm:$0xff]  ;;  %v221_v0 = vlaneseq }
  0x98   :  { %v222_v1 = vshrl.u32 %v221_v0, 7  ;;  %v639_v0 = vld [vmem:[#allocation7 + $0x1b8] sm:$0xff] }
  0x99   :  { %344 = vmatmul.mubr.f32.gmra.mrb[16].mxu0 %v75_v2  ;;  %488 = vmatmul.mubr.f32.gmra.mrb[16].mxu1 %v123_v3  ;;  %v219_v3 = vld [vmem:[%s1289_s2] sm:$0x3]  ;;  %s1091_s2 = smov [#allocation8]  }
  0x9a   :  { %349 = vmatprep.mubr.f32.mxu0 %v78_v4  ;;  %493 = vmatprep.mubr.f32.mxu1 %v126_v5  ;;  %v223_v2 = vsub.s32 0, %v222_v1  ;;  %v227_v4 = vsub.s32 1, %v222_v1  ;;  %s877_s26 = sshll.u32 %s1091_s2, 4  ;;  %s878_s26 = int_to_ptr.vmem [resolvable:$true] %s877_s26 }
  0x9b   :  { %s1058_s29 = scalar_lea.vmem %s878_s26, 12288  ;;  %p1063_p11 = scmp.lt.s32.totalorder %s878_s26, %s878_s26 }
  0x9c   :  { %v1172_v5 = vrot.slane %v219_v3, %v223_v2  ;;  %p1059_p10 = scmp.ne.s32.totalorder %s878_s26, %s1058_s29  ;;  %p1064_p12 = scmp.lt.s32.totalorder %s1058_s29, %s1058_s29 }
  0x9d   :  { %350 = vmatmul.mubr.f32.gmra.mrb[18].mxu0 %v77_v6  ;;  %494 = vmatmul.mubr.f32.gmra.mrb[18].mxu1 %v125_v7  ;;  %v1174_v6 = vrot.slane %v219_v3, %v227_v4 }
  0x9e   :  { %355 = vmatprep.mubr.f32.mxu0 %v80_v8  ;;  %499 = vmatprep.mubr.f32.mxu1 %v128_v9  ;;  %v584_v8 = vld [vmem:[#allocation7] sm:$0xff]  ;;  %p1065_p13 = por %p1064_p12, %p1063_p11 }
  0xa0   :  { %p1066_p0 = pnand %p1065_p13, %p1059_p10 }
  0xa1   :  { %356 = vmatmul.mubr.f32.gmra.mrb[20].mxu0 %v79_v10  ;;  %500 = vmatmul.mubr.f32.gmra.mrb[20].mxu1 %v127_v11  ;;  %v632_v10 = vld [vmem:[#allocation7 + $0x180] sm:$0xff] }
  0xa2   :  { %361 = vmatprep.mubr.f32.mxu0 %v82_v12  ;;  %505 = vmatprep.mubr.f32.mxu1 %v130_v13 }
  0xa5   :  { %362 = vmatmul.mubr.f32.gmra.mrb[22].mxu0 %v81_v14  ;;  %506 = vmatmul.mubr.f32.gmra.mrb[22].mxu1 %v129_v15  ;;  %v585_v14 = vld [vmem:[#allocation7 + $0x8] sm:$0xff] }
  0xa6   :  { %367 = vmatprep.mubr.f32.mxu0 %v84_v16  ;;  %511 = vmatprep.mubr.f32.mxu1 %v132_v17  ;;  %v633_v16 = vld [vmem:[#allocation7 + $0x188] sm:$0xff] }
  0xa9   :  { %368 = vmatmul.mubr.f32.gmra.mrb[24].mxu0 %v83_v18  ;;  %512 = vmatmul.mubr.f32.gmra.mrb[24].mxu1 %v131_v19 }
  0xaa   :  { %373 = vmatprep.mubr.f32.mxu0 %v86_v20  ;;  %517 = vmatprep.mubr.f32.mxu1 %v134_v21 }
  0xad   :  { %374 = vmatmul.mubr.f32.gmra.mrb[26].mxu0 %v85_v22  ;;  %518 = vmatmul.mubr.f32.gmra.mrb[26].mxu1 %v133_v23 }
  0xae   :  { %379 = vmatprep.mubr.f32.mxu0 %v88_v24  ;;  %523 = vmatprep.mubr.f32.mxu1 %v136_v25  ;;  %v586_v24 = vld [vmem:[#allocation7 + $0x10] sm:$0xff] }
  0xb1   :  { %380 = vmatmul.mubr.f32.gmra.mrb[28].mxu0 %v87_v26  ;;  %524 = vmatmul.mubr.f32.gmra.mrb[28].mxu1 %v135_v27  ;;  %v634_v26 = vld [vmem:[#allocation7 + $0x190] sm:$0xff] }
  0xb2   :  { %385 = vmatprep.mubr.f32.mxu0 %v90_v28  ;;  %529 = vmatprep.mubr.f32.mxu1 %v138_v29 }
  0xb5   :  { %386 = vmatmul.mubr.f32.gmra.mrb[30].mxu0 %v89_v30  ;;  %530 = vmatmul.mubr.f32.gmra.mrb[30].mxu1 %v137_v31  ;;  %v587_v30 = vld [vmem:[#allocation7 + $0x18] sm:$0xff] }
  0xb6   :  { %391 = vmatprep.mubr.f32.mxu0 %v92_v32  ;;  %535 = vmatprep.mubr.f32.mxu1 %v140_v33  ;;  %v635_v32 = vld [vmem:[#allocation7 + $0x198] sm:$0xff] }
  0xb9   :  { %392 = vmatmul.mubr.f32.gmra.mrb[32].mxu0 %v91_v34  ;;  %536 = vmatmul.mubr.f32.gmra.mrb[32].mxu1 %v139_v35 }
  0xba   :  { %397 = vmatprep.mubr.f32.mxu0 %v94_v36  ;;  %541 = vmatprep.mubr.f32.mxu1 %v142_v37 }
  0xbd   :  { %398 = vmatmul.mubr.f32.gmra.mrb[34].mxu0 %v93_v38  ;;  %542 = vmatmul.mubr.f32.gmra.mrb[34].mxu1 %v141_v39 }
  0xbe   :  { %403 = vmatprep.mubr.f32.mxu0 %v96_v40  ;;  %547 = vmatprep.mubr.f32.mxu1 %v144_v41  ;;  %v588_v40 = vld [vmem:[#allocation7 + $0x20] sm:$0xff] }
  0xc1   :  { %404 = vmatmul.mubr.f32.gmra.mrb[36].mxu0 %v95_v42  ;;  %548 = vmatmul.mubr.f32.gmra.mrb[36].mxu1 %v143_v43  ;;  %v636_v42 = vld [vmem:[#allocation7 + $0x1a0] sm:$0xff] }
  0xc2   :  { %409 = vmatprep.mubr.f32.mxu0 %v98_v44  ;;  %553 = vmatprep.mubr.f32.mxu1 %v146_v45 }
  0xc5   :  { %410 = vmatmul.mubr.f32.gmra.mrb[38].mxu0 %v97_v46  ;;  %554 = vmatmul.mubr.f32.gmra.mrb[38].mxu1 %v145_v47  ;;  %v589_v46 = vld [vmem:[#allocation7 + $0x28] sm:$0xff] }
  0xc6   :  { %415 = vmatprep.mubr.f32.mxu0 %v100_v48  ;;  %559 = vmatprep.mubr.f32.mxu1 %v148_v49  ;;  %v637_v48 = vld [vmem:[#allocation7 + $0x1a8] sm:$0xff] }
  0xc9   :  { %416 = vmatmul.mubr.f32.gmra.mrb[40].mxu0 %v99_v50  ;;  %560 = vmatmul.mubr.f32.gmra.mrb[40].mxu1 %v147_v51 }
  0xca   :  { %421 = vmatprep.mubr.f32.mxu0 %v102_v52  ;;  %565 = vmatprep.mubr.f32.mxu1 %v150_v53 }
  0xcd   :  { %422 = vmatmul.mubr.f32.gmra.mrb[42].mxu0 %v101_v54  ;;  %566 = vmatmul.mubr.f32.gmra.mrb[42].mxu1 %v149_v55 }
  0xce   :  { %427 = vmatprep.mubr.f32.mxu0 %v104_v56  ;;  %571 = vmatprep.mubr.f32.mxu1 %v152_v57  ;;  %v590_v56 = vld [vmem:[#allocation7 + $0x30] sm:$0xff] }
  0xd1   :  { %428 = vmatmul.mubr.f32.gmra.mrb[44].mxu0 %v103_v58  ;;  %572 = vmatmul.mubr.f32.gmra.mrb[44].mxu1 %v151_v59  ;;  %v638_v58 = vld [vmem:[#allocation7 + $0x1b0] sm:$0xff] }
  0xd2   :  { %433 = vmatprep.mubr.f32.mxu0 %v106_v60  ;;  %577 = vmatprep.mubr.f32.mxu1 %v154_v61 }
  0xd5   :  { %434 = vmatmul.mubr.f32.gmra.mrb[46].mxu0 %v105_v62  ;;  %578 = vmatmul.mubr.f32.gmra.mrb[46].mxu1 %v153_v63  ;;  %v591_v62 = vld [vmem:[#allocation7 + $0x38] sm:$0xff] }
 0x14c   :  { %v297_v7 = vpop.f32.mrb[0].mxu0  ;;  %v441_v9 = vpop.f32.mrb[0].mxu1 }
 0x14d   :  { %v298_v11 = vadd.f32 %v297_v7, %v1172_v5  ;;  %v442_v12 = vadd.f32 %v441_v9, %v1172_v5  ;;  %v299_v13 = vpop.f32.mrb[1].mxu0  ;;  %v443_v15 = vpop.f32.mrb[1].mxu1 }
 0x14e   :  { %v300_v17 = vadd.f32 %v299_v13, %v1174_v6  ;;  %v444_v18 = vadd.f32 %v443_v15, %v1174_v6 }
 0x14f   :  { %v680_v19 = vadd.f32 %v584_v8, %v298_v11  ;;  %v728_v20 = vadd.f32 %v632_v10, %v442_v12  ;;  %v592_v10 = vld [vmem:[#allocation7 + $0x40] sm:$0xff] }
 0x150   :  { %v681_v21 = vadd.f32 %v585_v14, %v300_v17  ;;  %v729_v22 = vadd.f32 %v633_v16, %v444_v18  ;;  %v303_v23 = vpop.f32.mrb[2].mxu0  ;;  %v447_v25 = vpop.f32.mrb[2].mxu1  ;;  %v640_v12 = vld [vmem:[#allocation7 + $0x1c0] sm:$0xff]  ;;  %v593_v16 = vld [vmem:[#allocation7 + $0x48] sm:$0xff] }
 0x151   :  { %776 = vst [vmem:[#allocation8] sm:$0xff] %v680_v19  ;;  %824 = vst [vmem:[#allocation8 + $0x180] sm:$0xff] %v728_v20  ;;  %v304_v27 = vadd.f32 %v303_v23, %v1172_v5  ;;  %v448_v28 = vadd.f32 %v447_v25, %v1172_v5  ;;  %v305_v29 = vpop.f32.mrb[3].mxu0  ;;  %v449_v31 = vpop.f32.mrb[3].mxu1  ;;  %v641_v18 = vld [vmem:[#allocation7 + $0x1c8] sm:$0xff] }
 0x152   :  { %777 = vst [vmem:[#allocation8 + $0x8] sm:$0xff] %v681_v21  ;;  %825 = vst [vmem:[#allocation8 + $0x188] sm:$0xff] %v729_v22  ;;  %v306_v33 = vadd.f32 %v305_v29, %v1174_v6  ;;  %v450_v34 = vadd.f32 %v449_v31, %v1174_v6 }
 0x153   :  { %v682_v35 = vadd.f32 %v586_v24, %v304_v27  ;;  %v730_v36 = vadd.f32 %v634_v26, %v448_v28  ;;  %v594_v26 = vld [vmem:[#allocation7 + $0x50] sm:$0xff] }
 0x154   :  { %v683_v37 = vadd.f32 %v587_v30, %v306_v33  ;;  %v731_v38 = vadd.f32 %v635_v32, %v450_v34  ;;  %v309_v39 = vpop.f32.mrb[4].mxu0  ;;  %v453_v41 = vpop.f32.mrb[4].mxu1  ;;  %v642_v28 = vld [vmem:[#allocation7 + $0x1d0] sm:$0xff]  ;;  %v595_v32 = vld [vmem:[#allocation7 + $0x58] sm:$0xff] }
 0x155   :  { %778 = vst [vmem:[#allocation8 + $0x10] sm:$0xff] %v682_v35  ;;  %826 = vst [vmem:[#allocation8 + $0x190] sm:$0xff] %v730_v36  ;;  %v310_v43 = vadd.f32 %v309_v39, %v1172_v5  ;;  %v454_v44 = vadd.f32 %v453_v41, %v1172_v5  ;;  %v311_v45 = vpop.f32.mrb[5].mxu0  ;;  %v455_v47 = vpop.f32.mrb[5].mxu1  ;;  %v643_v34 = vld [vmem:[#allocation7 + $0x1d8] sm:$0xff] }
 0x156   :  { %779 = vst [vmem:[#allocation8 + $0x18] sm:$0xff] %v683_v37  ;;  %827 = vst [vmem:[#allocation8 + $0x198] sm:$0xff] %v731_v38  ;;  %v312_v49 = vadd.f32 %v311_v45, %v1174_v6  ;;  %v456_v50 = vadd.f32 %v455_v47, %v1174_v6 }
 0x157   :  { %v684_v51 = vadd.f32 %v588_v40, %v310_v43  ;;  %v732_v52 = vadd.f32 %v636_v42, %v454_v44  ;;  %v596_v42 = vld [vmem:[#allocation7 + $0x60] sm:$0xff] }
 0x158   :  { %v685_v53 = vadd.f32 %v589_v46, %v312_v49  ;;  %v733_v54 = vadd.f32 %v637_v48, %v456_v50  ;;  %v315_v55 = vpop.f32.mrb[6].mxu0  ;;  %v459_v57 = vpop.f32.mrb[6].mxu1  ;;  %v644_v44 = vld [vmem:[#allocation7 + $0x1e0] sm:$0xff]  ;;  %v597_v48 = vld [vmem:[#allocation7 + $0x68] sm:$0xff] }
 0x159   :  { %780 = vst [vmem:[#allocation8 + $0x20] sm:$0xff] %v684_v51  ;;  %828 = vst [vmem:[#allocation8 + $0x1a0] sm:$0xff] %v732_v52  ;;  %v316_v59 = vadd.f32 %v315_v55, %v1172_v5  ;;  %v460_v60 = vadd.f32 %v459_v57, %v1172_v5  ;;  %v317_v61 = vpop.f32.mrb[7].mxu0  ;;  %v461_v63 = vpop.f32.mrb[7].mxu1  ;;  %v645_v50 = vld [vmem:[#allocation7 + $0x1e8] sm:$0xff] }
 0x15a   :  { %781 = vst [vmem:[#allocation8 + $0x28] sm:$0xff] %v685_v53  ;;  %829 = vst [vmem:[#allocation8 + $0x1a8] sm:$0xff] %v733_v54  ;;  %v318_v1 = vadd.f32 %v317_v61, %v1174_v6  ;;  %v462_v2 = vadd.f32 %v461_v63, %v1174_v6 }
 0x15b   :  { %v686_v3 = vadd.f32 %v590_v56, %v316_v59  ;;  %v734_v4 = vadd.f32 %v638_v58, %v460_v60  ;;  %v598_v58 = vld [vmem:[#allocation7 + $0x70] sm:$0xff] }
 0x15c   :  { %v687_v7 = vadd.f32 %v591_v62, %v318_v1  ;;  %v735_v8 = vadd.f32 %v639_v0, %v462_v2  ;;  %v321_v9 = vpop.f32.mrb[8].mxu0  ;;  %v465_v11 = vpop.f32.mrb[8].mxu1  ;;  %v646_v60 = vld [vmem:[#allocation7 + $0x1f0] sm:$0xff]  ;;  %v599_v0 = vld [vmem:[#allocation7 + $0x78] sm:$0xff] }
 0x15d   :  { %782 = vst [vmem:[#allocation8 + $0x30] sm:$0xff] %v686_v3  ;;  %830 = vst [vmem:[#allocation8 + $0x1b0] sm:$0xff] %v734_v4  ;;  %v322_v13 = vadd.f32 %v321_v9, %v1172_v5  ;;  %v466_v14 = vadd.f32 %v465_v11, %v1172_v5  ;;  %v323_v15 = vpop.f32.mrb[9].mxu0  ;;  %v467_v17 = vpop.f32.mrb[9].mxu1  ;;  %v647_v2 = vld [vmem:[#allocation7 + $0x1f8] sm:$0xff] }
 0x15e   :  { %783 = vst [vmem:[#allocation8 + $0x38] sm:$0xff] %v687_v7  ;;  %831 = vst [vmem:[#allocation8 + $0x1b8] sm:$0xff] %v735_v8  ;;  %v324_v19 = vadd.f32 %v323_v15, %v1174_v6  ;;  %v468_v20 = vadd.f32 %v467_v17, %v1174_v6 }
 0x15f   :  { %v688_v21 = vadd.f32 %v592_v10, %v322_v13  ;;  %v736_v22 = vadd.f32 %v640_v12, %v466_v14  ;;  %v600_v12 = vld [vmem:[#allocation7 + $0x80] sm:$0xff] }
 0x160   :  { %v689_v23 = vadd.f32 %v593_v16, %v324_v19  ;;  %v737_v24 = vadd.f32 %v641_v18, %v468_v20  ;;  %v327_v25 = vpop.f32.mrb[10].mxu0  ;;  %v471_v27 = vpop.f32.mrb[10].mxu1  ;;  %v648_v14 = vld [vmem:[#allocation7 + $0x200] sm:$0xff]  ;;  %v601_v18 = vld [vmem:[#allocation7 + $0x88] sm:$0xff] }
 0x161   :  { %784 = vst [vmem:[#allocation8 + $0x40] sm:$0xff] %v688_v21  ;;  %832 = vst [vmem:[#allocation8 + $0x1c0] sm:$0xff] %v736_v22  ;;  %v328_v29 = vadd.f32 %v327_v25, %v1172_v5  ;;  %v472_v30 = vadd.f32 %v471_v27, %v1172_v5  ;;  %v329_v31 = vpop.f32.mrb[11].mxu0  ;;  %v473_v33 = vpop.f32.mrb[11].mxu1  ;;  %v649_v20 = vld [vmem:[#allocation7 + $0x208] sm:$0xff] }
 0x162   :  { %785 = vst [vmem:[#allocation8 + $0x48] sm:$0xff] %v689_v23  ;;  %833 = vst [vmem:[#allocation8 + $0x1c8] sm:$0xff] %v737_v24  ;;  %v330_v35 = vadd.f32 %v329_v31, %v1174_v6  ;;  %v474_v36 = vadd.f32 %v473_v33, %v1174_v6 }
 0x163   :  { %v690_v37 = vadd.f32 %v594_v26, %v328_v29  ;;  %v738_v38 = vadd.f32 %v642_v28, %v472_v30  ;;  %v602_v28 = vld [vmem:[#allocation7 + $0x90] sm:$0xff] }
 0x164   :  { %v691_v39 = vadd.f32 %v595_v32, %v330_v35  ;;  %v739_v40 = vadd.f32 %v643_v34, %v474_v36  ;;  %v333_v41 = vpop.f32.mrb[12].mxu0  ;;  %v477_v43 = vpop.f32.mrb[12].mxu1  ;;  %v650_v30 = vld [vmem:[#allocation7 + $0x210] sm:$0xff]  ;;  %v603_v34 = vld [vmem:[#allocation7 + $0x98] sm:$0xff] }
 0x165   :  { %786 = vst [vmem:[#allocation8 + $0x50] sm:$0xff] %v690_v37  ;;  %834 = vst [vmem:[#allocation8 + $0x1d0] sm:$0xff] %v738_v38  ;;  %v334_v45 = vadd.f32 %v333_v41, %v1172_v5  ;;  %v478_v46 = vadd.f32 %v477_v43, %v1172_v5  ;;  %v335_v47 = vpop.f32.mrb[13].mxu0  ;;  %v479_v49 = vpop.f32.mrb[13].mxu1  ;;  %v651_v36 = vld [vmem:[#allocation7 + $0x218] sm:$0xff] }
 0x166   :  { %787 = vst [vmem:[#allocation8 + $0x58] sm:$0xff] %v691_v39  ;;  %835 = vst [vmem:[#allocation8 + $0x1d8] sm:$0xff] %v739_v40  ;;  %v336_v51 = vadd.f32 %v335_v47, %v1174_v6  ;;  %v480_v52 = vadd.f32 %v479_v49, %v1174_v6 }
 0x167   :  { %v692_v53 = vadd.f32 %v596_v42, %v334_v45  ;;  %v740_v54 = vadd.f32 %v644_v44, %v478_v46  ;;  %v604_v44 = vld [vmem:[#allocation7 + $0xa0] sm:$0xff] }
 0x168   :  { %v693_v55 = vadd.f32 %v597_v48, %v336_v51  ;;  %v741_v56 = vadd.f32 %v645_v50, %v480_v52  ;;  %v339_v57 = vpop.f32.mrb[14].mxu0  ;;  %v483_v59 = vpop.f32.mrb[14].mxu1  ;;  %v652_v46 = vld [vmem:[#allocation7 + $0x220] sm:$0xff]  ;;  %v605_v50 = vld [vmem:[#allocation7 + $0xa8] sm:$0xff] }
 0x169   :  { %788 = vst [vmem:[#allocation8 + $0x60] sm:$0xff] %v692_v53  ;;  %836 = vst [vmem:[#allocation8 + $0x1e0] sm:$0xff] %v740_v54  ;;  %v340_v61 = vadd.f32 %v339_v57, %v1172_v5  ;;  %v484_v62 = vadd.f32 %v483_v59, %v1172_v5  ;;  %v341_v63 = vpop.f32.mrb[15].mxu0  ;;  %v485_v1 = vpop.f32.mrb[15].mxu1  ;;  %v653_v52 = vld [vmem:[#allocation7 + $0x228] sm:$0xff] }
 0x16a   :  { %789 = vst [vmem:[#allocation8 + $0x68] sm:$0xff] %v693_v55  ;;  %837 = vst [vmem:[#allocation8 + $0x1e8] sm:$0xff] %v741_v56  ;;  %v342_v3 = vadd.f32 %v341_v63, %v1174_v6  ;;  %v486_v4 = vadd.f32 %v485_v1, %v1174_v6 }
 0x16b   :  { %v694_v7 = vadd.f32 %v598_v58, %v340_v61  ;;  %v742_v8 = vadd.f32 %v646_v60, %v484_v62  ;;  %v606_v60 = vld [vmem:[#allocation7 + $0xb0] sm:$0xff] }
 0x16c   :  { %v695_v9 = vadd.f32 %v599_v0, %v342_v3  ;;  %v743_v10 = vadd.f32 %v647_v2, %v486_v4  ;;  %v345_v11 = vpop.f32.mrb[16].mxu0  ;;  %v489_v13 = vpop.f32.mrb[16].mxu1  ;;  %v654_v62 = vld [vmem:[#allocation7 + $0x230] sm:$0xff]  ;;  %v607_v2 = vld [vmem:[#allocation7 + $0xb8] sm:$0xff] }
 0x16d   :  { %790 = vst [vmem:[#allocation8 + $0x70] sm:$0xff] %v694_v7  ;;  %838 = vst [vmem:[#allocation8 + $0x1f0] sm:$0xff] %v742_v8  ;;  %v346_v15 = vadd.f32 %v345_v11, %v1172_v5  ;;  %v490_v16 = vadd.f32 %v489_v13, %v1172_v5  ;;  %v347_v17 = vpop.f32.mrb[17].mxu0  ;;  %v491_v19 = vpop.f32.mrb[17].mxu1  ;;  %v655_v4 = vld [vmem:[#allocation7 + $0x238] sm:$0xff] }
 0x16e   :  { %791 = vst [vmem:[#allocation8 + $0x78] sm:$0xff] %v695_v9  ;;  %839 = vst [vmem:[#allocation8 + $0x1f8] sm:$0xff] %v743_v10  ;;  %v348_v21 = vadd.f32 %v347_v17, %v1174_v6  ;;  %v492_v22 = vadd.f32 %v491_v19, %v1174_v6 }
 0x16f   :  { %v696_v23 = vadd.f32 %v600_v12, %v346_v15  ;;  %v744_v24 = vadd.f32 %v648_v14, %v490_v16  ;;  %v608_v14 = vld [vmem:[#allocation7 + $0xc0] sm:$0xff] }
 0x170   :  { %v697_v25 = vadd.f32 %v601_v18, %v348_v21  ;;  %v745_v26 = vadd.f32 %v649_v20, %v492_v22  ;;  %v351_v27 = vpop.f32.mrb[18].mxu0  ;;  %v495_v29 = vpop.f32.mrb[18].mxu1  ;;  %v656_v16 = vld [vmem:[#allocation7 + $0x240] sm:$0xff]  ;;  %v609_v20 = vld [vmem:[#allocation7 + $0xc8] sm:$0xff] }
 0x171   :  { %792 = vst [vmem:[#allocation8 + $0x80] sm:$0xff] %v696_v23  ;;  %840 = vst [vmem:[#allocation8 + $0x200] sm:$0xff] %v744_v24  ;;  %v352_v31 = vadd.f32 %v351_v27, %v1172_v5  ;;  %v496_v32 = vadd.f32 %v495_v29, %v1172_v5  ;;  %v353_v33 = vpop.f32.mrb[19].mxu0  ;;  %v497_v35 = vpop.f32.mrb[19].mxu1  ;;  %v657_v22 = vld [vmem:[#allocation7 + $0x248] sm:$0xff] }
 0x172   :  { %793 = vst [vmem:[#allocation8 + $0x88] sm:$0xff] %v697_v25  ;;  %841 = vst [vmem:[#allocation8 + $0x208] sm:$0xff] %v745_v26  ;;  %v354_v37 = vadd.f32 %v353_v33, %v1174_v6  ;;  %v498_v38 = vadd.f32 %v497_v35, %v1174_v6 }
 0x173   :  { %v698_v39 = vadd.f32 %v602_v28, %v352_v31  ;;  %v746_v40 = vadd.f32 %v650_v30, %v496_v32  ;;  %v610_v30 = vld [vmem:[#allocation7 + $0xd0] sm:$0xff] }
 0x174   :  { %v699_v41 = vadd.f32 %v603_v34, %v354_v37  ;;  %v747_v42 = vadd.f32 %v651_v36, %v498_v38  ;;  %v357_v43 = vpop.f32.mrb[20].mxu0  ;;  %v501_v45 = vpop.f32.mrb[20].mxu1  ;;  %v658_v32 = vld [vmem:[#allocation7 + $0x250] sm:$0xff]  ;;  %v611_v36 = vld [vmem:[#allocation7 + $0xd8] sm:$0xff] }
 0x175   :  { %794 = vst [vmem:[#allocation8 + $0x90] sm:$0xff] %v698_v39  ;;  %842 = vst [vmem:[#allocation8 + $0x210] sm:$0xff] %v746_v40  ;;  %v358_v47 = vadd.f32 %v357_v43, %v1172_v5  ;;  %v502_v48 = vadd.f32 %v501_v45, %v1172_v5  ;;  %v359_v49 = vpop.f32.mrb[21].mxu0  ;;  %v503_v51 = vpop.f32.mrb[21].mxu1  ;;  %v659_v38 = vld [vmem:[#allocation7 + $0x258] sm:$0xff] }
 0x176   :  { %795 = vst [vmem:[#allocation8 + $0x98] sm:$0xff] %v699_v41  ;;  %843 = vst [vmem:[#allocation8 + $0x218] sm:$0xff] %v747_v42  ;;  %v360_v53 = vadd.f32 %v359_v49, %v1174_v6  ;;  %v504_v54 = vadd.f32 %v503_v51, %v1174_v6 }
 0x177   :  { %v700_v55 = vadd.f32 %v604_v44, %v358_v47  ;;  %v748_v56 = vadd.f32 %v652_v46, %v502_v48  ;;  %v612_v46 = vld [vmem:[#allocation7 + $0xe0] sm:$0xff] }
 0x178   :  { %v701_v57 = vadd.f32 %v605_v50, %v360_v53  ;;  %v749_v58 = vadd.f32 %v653_v52, %v504_v54  ;;  %v363_v59 = vpop.f32.mrb[22].mxu0  ;;  %v507_v61 = vpop.f32.mrb[22].mxu1  ;;  %v660_v48 = vld [vmem:[#allocation7 + $0x260] sm:$0xff]  ;;  %v613_v52 = vld [vmem:[#allocation7 + $0xe8] sm:$0xff] }
 0x179   :  { %796 = vst [vmem:[#allocation8 + $0xa0] sm:$0xff] %v700_v55  ;;  %844 = vst [vmem:[#allocation8 + $0x220] sm:$0xff] %v748_v56  ;;  %v364_v63 = vadd.f32 %v363_v59, %v1172_v5  ;;  %v508_v0 = vadd.f32 %v507_v61, %v1172_v5  ;;  %v365_v1 = vpop.f32.mrb[23].mxu0  ;;  %v509_v3 = vpop.f32.mrb[23].mxu1  ;;  %v661_v54 = vld [vmem:[#allocation7 + $0x268] sm:$0xff] }
 0x17a   :  { %797 = vst [vmem:[#allocation8 + $0xa8] sm:$0xff] %v701_v57  ;;  %845 = vst [vmem:[#allocation8 + $0x228] sm:$0xff] %v749_v58  ;;  %v366_v7 = vadd.f32 %v365_v1, %v1174_v6  ;;  %v510_v8 = vadd.f32 %v509_v3, %v1174_v6 }
 0x17b   :  { %v702_v9 = vadd.f32 %v606_v60, %v364_v63  ;;  %v750_v10 = vadd.f32 %v654_v62, %v508_v0  ;;  %v614_v62 = vld [vmem:[#allocation7 + $0xf0] sm:$0xff] }
 0x17c   :  { %v703_v11 = vadd.f32 %v607_v2, %v366_v7  ;;  %v751_v12 = vadd.f32 %v655_v4, %v510_v8  ;;  %v369_v13 = vpop.f32.mrb[24].mxu0  ;;  %v513_v15 = vpop.f32.mrb[24].mxu1  ;;  %v662_v0 = vld [vmem:[#allocation7 + $0x270] sm:$0xff]  ;;  %v615_v4 = vld [vmem:[#allocation7 + $0xf8] sm:$0xff] }
 0x17d   :  { %798 = vst [vmem:[#allocation8 + $0xb0] sm:$0xff] %v702_v9  ;;  %846 = vst [vmem:[#allocation8 + $0x230] sm:$0xff] %v750_v10  ;;  %v370_v17 = vadd.f32 %v369_v13, %v1172_v5  ;;  %v514_v18 = vadd.f32 %v513_v15, %v1172_v5  ;;  %v371_v19 = vpop.f32.mrb[25].mxu0  ;;  %v515_v21 = vpop.f32.mrb[25].mxu1  ;;  %v663_v8 = vld [vmem:[#allocation7 + $0x278] sm:$0xff] }
 0x17e   :  { %799 = vst [vmem:[#allocation8 + $0xb8] sm:$0xff] %v703_v11  ;;  %847 = vst [vmem:[#allocation8 + $0x238] sm:$0xff] %v751_v12  ;;  %v372_v23 = vadd.f32 %v371_v19, %v1174_v6  ;;  %v516_v24 = vadd.f32 %v515_v21, %v1174_v6 }
 0x17f   :  { %v704_v25 = vadd.f32 %v608_v14, %v370_v17  ;;  %v752_v26 = vadd.f32 %v656_v16, %v514_v18  ;;  %v616_v16 = vld [vmem:[#allocation7 + $0x100] sm:$0xff] }
 0x180   :  { %v705_v27 = vadd.f32 %v609_v20, %v372_v23  ;;  %v753_v28 = vadd.f32 %v657_v22, %v516_v24  ;;  %v375_v29 = vpop.f32.mrb[26].mxu0  ;;  %v519_v31 = vpop.f32.mrb[26].mxu1  ;;  %v664_v18 = vld [vmem:[#allocation7 + $0x280] sm:$0xff]  ;;  %v617_v22 = vld [vmem:[#allocation7 + $0x108] sm:$0xff] }
 0x181   :  { %800 = vst [vmem:[#allocation8 + $0xc0] sm:$0xff] %v704_v25  ;;  %848 = vst [vmem:[#allocation8 + $0x240] sm:$0xff] %v752_v26  ;;  %v376_v33 = vadd.f32 %v375_v29, %v1172_v5  ;;  %v520_v34 = vadd.f32 %v519_v31, %v1172_v5  ;;  %v377_v35 = vpop.f32.mrb[27].mxu0  ;;  %v521_v37 = vpop.f32.mrb[27].mxu1  ;;  %v665_v24 = vld [vmem:[#allocation7 + $0x288] sm:$0xff] }
 0x182   :  { %801 = vst [vmem:[#allocation8 + $0xc8] sm:$0xff] %v705_v27  ;;  %849 = vst [vmem:[#allocation8 + $0x248] sm:$0xff] %v753_v28  ;;  %v378_v39 = vadd.f32 %v377_v35, %v1174_v6  ;;  %v522_v40 = vadd.f32 %v521_v37, %v1174_v6 }
 0x183   :  { %v706_v41 = vadd.f32 %v610_v30, %v376_v33  ;;  %v754_v42 = vadd.f32 %v658_v32, %v520_v34  ;;  %v618_v32 = vld [vmem:[#allocation7 + $0x110] sm:$0xff] }
 0x184   :  { %v707_v43 = vadd.f32 %v611_v36, %v378_v39  ;;  %v755_v44 = vadd.f32 %v659_v38, %v522_v40  ;;  %v381_v45 = vpop.f32.mrb[28].mxu0  ;;  %v525_v47 = vpop.f32.mrb[28].mxu1  ;;  %v666_v34 = vld [vmem:[#allocation7 + $0x290] sm:$0xff]  ;;  %v619_v38 = vld [vmem:[#allocation7 + $0x118] sm:$0xff] }
 0x185   :  { %802 = vst [vmem:[#allocation8 + $0xd0] sm:$0xff] %v706_v41  ;;  %850 = vst [vmem:[#allocation8 + $0x250] sm:$0xff] %v754_v42  ;;  %v382_v49 = vadd.f32 %v381_v45, %v1172_v5  ;;  %v526_v50 = vadd.f32 %v525_v47, %v1172_v5  ;;  %v383_v51 = vpop.f32.mrb[29].mxu0  ;;  %v527_v53 = vpop.f32.mrb[29].mxu1  ;;  %v667_v40 = vld [vmem:[#allocation7 + $0x298] sm:$0xff] }
 0x186   :  { %803 = vst [vmem:[#allocation8 + $0xd8] sm:$0xff] %v707_v43  ;;  %851 = vst [vmem:[#allocation8 + $0x258] sm:$0xff] %v755_v44  ;;  %v384_v55 = vadd.f32 %v383_v51, %v1174_v6  ;;  %v528_v56 = vadd.f32 %v527_v53, %v1174_v6 }
 0x187   :  { %v708_v57 = vadd.f32 %v612_v46, %v382_v49  ;;  %v756_v58 = vadd.f32 %v660_v48, %v526_v50  ;;  %v620_v48 = vld [vmem:[#allocation7 + $0x120] sm:$0xff] }
 0x188   :  { %v709_v59 = vadd.f32 %v613_v52, %v384_v55  ;;  %v757_v60 = vadd.f32 %v661_v54, %v528_v56  ;;  %v387_v61 = vpop.f32.mrb[30].mxu0  ;;  %v531_v63 = vpop.f32.mrb[30].mxu1  ;;  %v668_v50 = vld [vmem:[#allocation7 + $0x2a0] sm:$0xff]  ;;  %v621_v54 = vld [vmem:[#allocation7 + $0x128] sm:$0xff] }
 0x189   :  { %804 = vst [vmem:[#allocation8 + $0xe0] sm:$0xff] %v708_v57  ;;  %852 = vst [vmem:[#allocation8 + $0x260] sm:$0xff] %v756_v58  ;;  %v388_v1 = vadd.f32 %v387_v61, %v1172_v5  ;;  %v532_v2 = vadd.f32 %v531_v63, %v1172_v5  ;;  %v389_v3 = vpop.f32.mrb[31].mxu0  ;;  %v533_v7 = vpop.f32.mrb[31].mxu1  ;;  %v669_v56 = vld [vmem:[#allocation7 + $0x2a8] sm:$0xff] }
 0x18a   :  { %805 = vst [vmem:[#allocation8 + $0xe8] sm:$0xff] %v709_v59  ;;  %853 = vst [vmem:[#allocation8 + $0x268] sm:$0xff] %v757_v60  ;;  %v390_v9 = vadd.f32 %v389_v3, %v1174_v6  ;;  %v534_v10 = vadd.f32 %v533_v7, %v1174_v6 }
 0x18b   :  { %v710_v11 = vadd.f32 %v614_v62, %v388_v1  ;;  %v758_v12 = vadd.f32 %v662_v0, %v532_v2  ;;  %v622_v0 = vld [vmem:[#allocation7 + $0x130] sm:$0xff] }
 0x18c   :  { %v711_v13 = vadd.f32 %v615_v4, %v390_v9  ;;  %v759_v14 = vadd.f32 %v663_v8, %v534_v10  ;;  %v393_v15 = vpop.f32.mrb[32].mxu0  ;;  %v537_v17 = vpop.f32.mrb[32].mxu1  ;;  %v670_v2 = vld [vmem:[#allocation7 + $0x2b0] sm:$0xff]  ;;  %v623_v8 = vld [vmem:[#allocation7 + $0x138] sm:$0xff] }
 0x18d   :  { %806 = vst [vmem:[#allocation8 + $0xf0] sm:$0xff] %v710_v11  ;;  %854 = vst [vmem:[#allocation8 + $0x270] sm:$0xff] %v758_v12  ;;  %v394_v19 = vadd.f32 %v393_v15, %v1172_v5  ;;  %v538_v20 = vadd.f32 %v537_v17, %v1172_v5  ;;  %v395_v21 = vpop.f32.mrb[33].mxu0  ;;  %v539_v23 = vpop.f32.mrb[33].mxu1  ;;  %v671_v10 = vld [vmem:[#allocation7 + $0x2b8] sm:$0xff] }
 0x18e   :  { %807 = vst [vmem:[#allocation8 + $0xf8] sm:$0xff] %v711_v13  ;;  %855 = vst [vmem:[#allocation8 + $0x278] sm:$0xff] %v759_v14  ;;  %v396_v25 = vadd.f32 %v395_v21, %v1174_v6  ;;  %v540_v26 = vadd.f32 %v539_v23, %v1174_v6 }
 0x18f   :  { %v712_v27 = vadd.f32 %v616_v16, %v394_v19  ;;  %v760_v28 = vadd.f32 %v664_v18, %v538_v20  ;;  %v624_v18 = vld [vmem:[#allocation7 + $0x140] sm:$0xff] }
 0x190   :  { %v713_v29 = vadd.f32 %v617_v22, %v396_v25  ;;  %v761_v30 = vadd.f32 %v665_v24, %v540_v26  ;;  %v399_v31 = vpop.f32.mrb[34].mxu0  ;;  %v543_v33 = vpop.f32.mrb[34].mxu1  ;;  %v672_v20 = vld [vmem:[#allocation7 + $0x2c0] sm:$0xff]  ;;  %v625_v24 = vld [vmem:[#allocation7 + $0x148] sm:$0xff] }
 0x191   :  { %808 = vst [vmem:[#allocation8 + $0x100] sm:$0xff] %v712_v27  ;;  %856 = vst [vmem:[#allocation8 + $0x280] sm:$0xff] %v760_v28  ;;  %v400_v35 = vadd.f32 %v399_v31, %v1172_v5  ;;  %v544_v36 = vadd.f32 %v543_v33, %v1172_v5  ;;  %v401_v37 = vpop.f32.mrb[35].mxu0  ;;  %v545_v39 = vpop.f32.mrb[35].mxu1  ;;  %v673_v26 = vld [vmem:[#allocation7 + $0x2c8] sm:$0xff] }
 0x192   :  { %809 = vst [vmem:[#allocation8 + $0x108] sm:$0xff] %v713_v29  ;;  %857 = vst [vmem:[#allocation8 + $0x288] sm:$0xff] %v761_v30  ;;  %v402_v41 = vadd.f32 %v401_v37, %v1174_v6  ;;  %v546_v42 = vadd.f32 %v545_v39, %v1174_v6 }
 0x193   :  { %v714_v43 = vadd.f32 %v618_v32, %v400_v35  ;;  %v762_v44 = vadd.f32 %v666_v34, %v544_v36  ;;  %v626_v34 = vld [vmem:[#allocation7 + $0x150] sm:$0xff] }
 0x194   :  { %v715_v45 = vadd.f32 %v619_v38, %v402_v41  ;;  %v763_v46 = vadd.f32 %v667_v40, %v546_v42  ;;  %v405_v47 = vpop.f32.mrb[36].mxu0  ;;  %v549_v49 = vpop.f32.mrb[36].mxu1  ;;  %v674_v36 = vld [vmem:[#allocation7 + $0x2d0] sm:$0xff]  ;;  %v627_v40 = vld [vmem:[#allocation7 + $0x158] sm:$0xff] }
 0x195   :  { %810 = vst [vmem:[#allocation8 + $0x110] sm:$0xff] %v714_v43  ;;  %858 = vst [vmem:[#allocation8 + $0x290] sm:$0xff] %v762_v44  ;;  %v406_v51 = vadd.f32 %v405_v47, %v1172_v5  ;;  %v550_v52 = vadd.f32 %v549_v49, %v1172_v5  ;;  %v407_v53 = vpop.f32.mrb[37].mxu0  ;;  %v551_v55 = vpop.f32.mrb[37].mxu1  ;;  %v675_v42 = vld [vmem:[#allocation7 + $0x2d8] sm:$0xff] }
 0x196   :  { %811 = vst [vmem:[#allocation8 + $0x118] sm:$0xff] %v715_v45  ;;  %859 = vst [vmem:[#allocation8 + $0x298] sm:$0xff] %v763_v46  ;;  %v408_v57 = vadd.f32 %v407_v53, %v1174_v6  ;;  %v552_v58 = vadd.f32 %v551_v55, %v1174_v6 }
 0x197   :  { %v716_v59 = vadd.f32 %v620_v48, %v406_v51  ;;  %v764_v60 = vadd.f32 %v668_v50, %v550_v52  ;;  %v628_v50 = vld [vmem:[#allocation7 + $0x160] sm:$0xff] }
 0x198   :  { %v717_v61 = vadd.f32 %v621_v54, %v408_v57  ;;  %v765_v62 = vadd.f32 %v669_v56, %v552_v58  ;;  %v411_v63 = vpop.f32.mrb[38].mxu0  ;;  %v555_v1 = vpop.f32.mrb[38].mxu1  ;;  %v676_v52 = vld [vmem:[#allocation7 + $0x2e0] sm:$0xff]  ;;  %v629_v56 = vld [vmem:[#allocation7 + $0x168] sm:$0xff] }
 0x199   :  { %812 = vst [vmem:[#allocation8 + $0x120] sm:$0xff] %v716_v59  ;;  %860 = vst [vmem:[#allocation8 + $0x2a0] sm:$0xff] %v764_v60  ;;  %v412_v3 = vadd.f32 %v411_v63, %v1172_v5  ;;  %v556_v4 = vadd.f32 %v555_v1, %v1172_v5  ;;  %v413_v7 = vpop.f32.mrb[39].mxu0  ;;  %v557_v9 = vpop.f32.mrb[39].mxu1  ;;  %v677_v58 = vld [vmem:[#allocation7 + $0x2e8] sm:$0xff] }
 0x19a   :  { %813 = vst [vmem:[#allocation8 + $0x128] sm:$0xff] %v717_v61  ;;  %861 = vst [vmem:[#allocation8 + $0x2a8] sm:$0xff] %v765_v62  ;;  %v414_v11 = vadd.f32 %v413_v7, %v1174_v6  ;;  %v558_v12 = vadd.f32 %v557_v9, %v1174_v6 }
 0x19b   :  { %v718_v13 = vadd.f32 %v622_v0, %v412_v3  ;;  %v766_v14 = vadd.f32 %v670_v2, %v556_v4  ;;  %v630_v2 = vld [vmem:[#allocation7 + $0x170] sm:$0xff] }
 0x19c   :  { %v719_v15 = vadd.f32 %v623_v8, %v414_v11  ;;  %v767_v16 = vadd.f32 %v671_v10, %v558_v12  ;;  %v417_v17 = vpop.f32.mrb[40].mxu0  ;;  %v561_v19 = vpop.f32.mrb[40].mxu1  ;;  %v678_v4 = vld [vmem:[#allocation7 + $0x2f0] sm:$0xff]  ;;  %v631_v10 = vld [vmem:[#allocation7 + $0x178] sm:$0xff] }
 0x19d   :  { %814 = vst [vmem:[#allocation8 + $0x130] sm:$0xff] %v718_v13  ;;  %862 = vst [vmem:[#allocation8 + $0x2b0] sm:$0xff] %v766_v14  ;;  %v418_v21 = vadd.f32 %v417_v17, %v1172_v5  ;;  %v562_v22 = vadd.f32 %v561_v19, %v1172_v5  ;;  %v419_v23 = vpop.f32.mrb[41].mxu0  ;;  %v563_v25 = vpop.f32.mrb[41].mxu1  ;;  %v679_v12 = vld [vmem:[#allocation7 + $0x2f8] sm:$0xff] }
 0x19e   :  { %815 = vst [vmem:[#allocation8 + $0x138] sm:$0xff] %v719_v15  ;;  %863 = vst [vmem:[#allocation8 + $0x2b8] sm:$0xff] %v767_v16  ;;  %v420_v27 = vadd.f32 %v419_v23, %v1174_v6  ;;  %v564_v28 = vadd.f32 %v563_v25, %v1174_v6 }
 0x19f   :  { %v720_v29 = vadd.f32 %v624_v18, %v418_v21  ;;  %v768_v30 = vadd.f32 %v672_v20, %v562_v22 }
 0x1a0   :  { %v721_v31 = vadd.f32 %v625_v24, %v420_v27  ;;  %v769_v32 = vadd.f32 %v673_v26, %v564_v28  ;;  %v423_v33 = vpop.f32.mrb[42].mxu0  ;;  %v567_v35 = vpop.f32.mrb[42].mxu1 }
 0x1a1   :  { %816 = vst [vmem:[#allocation8 + $0x140] sm:$0xff] %v720_v29  ;;  %864 = vst [vmem:[#allocation8 + $0x2c0] sm:$0xff] %v768_v30  ;;  %v424_v37 = vadd.f32 %v423_v33, %v1172_v5  ;;  %v568_v38 = vadd.f32 %v567_v35, %v1172_v5  ;;  %v425_v39 = vpop.f32.mrb[43].mxu0  ;;  %v569_v41 = vpop.f32.mrb[43].mxu1 }
 0x1a2   :  { %817 = vst [vmem:[#allocation8 + $0x148] sm:$0xff] %v721_v31  ;;  %865 = vst [vmem:[#allocation8 + $0x2c8] sm:$0xff] %v769_v32  ;;  %v426_v43 = vadd.f32 %v425_v39, %v1174_v6  ;;  %v570_v44 = vadd.f32 %v569_v41, %v1174_v6 }
 0x1a3   :  { %v722_v45 = vadd.f32 %v626_v34, %v424_v37  ;;  %v770_v46 = vadd.f32 %v674_v36, %v568_v38 }
 0x1a4   :  { %v723_v47 = vadd.f32 %v627_v40, %v426_v43  ;;  %v771_v48 = vadd.f32 %v675_v42, %v570_v44  ;;  %v429_v49 = vpop.f32.mrb[44].mxu0  ;;  %v573_v51 = vpop.f32.mrb[44].mxu1 }
 0x1a5   :  { %818 = vst [vmem:[#allocation8 + $0x150] sm:$0xff] %v722_v45  ;;  %866 = vst [vmem:[#allocation8 + $0x2d0] sm:$0xff] %v770_v46  ;;  %v430_v53 = vadd.f32 %v429_v49, %v1172_v5  ;;  %v574_v54 = vadd.f32 %v573_v51, %v1172_v5  ;;  %v431_v55 = vpop.f32.mrb[45].mxu0  ;;  %v575_v57 = vpop.f32.mrb[45].mxu1 }
 0x1a6   :  { %819 = vst [vmem:[#allocation8 + $0x158] sm:$0xff] %v723_v47  ;;  %867 = vst [vmem:[#allocation8 + $0x2d8] sm:$0xff] %v771_v48  ;;  %v432_v59 = vadd.f32 %v431_v55, %v1174_v6  ;;  %v576_v60 = vadd.f32 %v575_v57, %v1174_v6 }
 0x1a7   :  { %v724_v61 = vadd.f32 %v628_v50, %v430_v53  ;;  %v772_v62 = vadd.f32 %v676_v52, %v574_v54 }
 0x1a8   :  { %v725_v63 = vadd.f32 %v629_v56, %v432_v59  ;;  %v773_v0 = vadd.f32 %v677_v58, %v576_v60  ;;  %v435_v1 = vpop.f32.mrb[46].mxu0  ;;  %v579_v3 = vpop.f32.mrb[46].mxu1 }
 0x1a9   :  { %820 = vst [vmem:[#allocation8 + $0x160] sm:$0xff] %v724_v61  ;;  %868 = vst [vmem:[#allocation8 + $0x2e0] sm:$0xff] %v772_v62  ;;  %v436_v7 = vadd.f32 %v435_v1, %v1172_v5  ;;  %v580_v8 = vadd.f32 %v579_v3, %v1172_v5  ;;  %v437_v9 = vpop.f32.mrb[47].mxu0  ;;  %v581_v11 = vpop.f32.mrb[47].mxu1 }
 0x1aa   :  { %821 = vst [vmem:[#allocation8 + $0x168] sm:$0xff] %v725_v63  ;;  %869 = vst [vmem:[#allocation8 + $0x2e8] sm:$0xff] %v773_v0  ;;  %v438_v13 = vadd.f32 %v437_v9, %v1174_v6  ;;  %v582_v14 = vadd.f32 %v581_v11, %v1174_v6 }
 0x1ab   :  { %v726_v15 = vadd.f32 %v630_v2, %v436_v7  ;;  %v774_v16 = vadd.f32 %v678_v4, %v580_v8 }
 0x1ac   :  { %v727_v17 = vadd.f32 %v631_v10, %v438_v13  ;;  %v775_v18 = vadd.f32 %v679_v12, %v582_v14 }
 0x1ad   :  { %822 = vst [vmem:[#allocation8 + $0x170] sm:$0xff] %v726_v15  ;;  %870 = vst [vmem:[#allocation8 + $0x2f0] sm:$0xff] %v774_v16 }
 0x1ae   :  { %823 = vst [vmem:[#allocation8 + $0x178] sm:$0xff] %v727_v17  ;;  %871 = vst [vmem:[#allocation8 + $0x2f8] sm:$0xff] %v775_v18 }
 0x1af   :  { %1069 = shalt.err (!%p1066_p0)
}
 0x1b0   :  { %s1070_s6 = scalar_lea.hbm %s1291_s4, 12288 }
 0x1b1   :  { %p1071_p1 = scmp.ne.s32.totalorder %s1291_s4, %s1070_s6  ;;  %p1074_p2 = scmp.lt.u32.totalorder %s1070_s6, %s1291_s4 }
 0x1b3   :  { %p1076_p3 = pnand %p1074_p2, %p1071_p1 }
 0x1b5   :  { %1079 = shalt.err (!%p1076_p3)
}
 0x1b6   :  { %883 = dma.vmem_to_hbm [thread:$0]  %s878_s26, 12288, %s1291_s4, [#allocation4], %s1088_s27, %s1088_s27, %s1089_s28  }
 0x1b7   :  { %1084 = dma.done.wait [#allocation4], 12288  }
 0x1b8   :  { %1085 = vsyncadd [#allocation4], 4294955008 }
 0x1b9   :  { %887 = vsyncpa [#allocation3], 1 }
 0x1ba   :  { %888 = vsyncpa [#allocation6], 1 }
 0x1bb   :  { %889 = vsyncpa [#allocation4], 1 }

</bundles_post_ra>
